<compile_context>
chip_gen: v5e
topology: v5e:2x2
jax: 0.10.0
libtpu: 0.0.40
codegen_flags: <defaults>
</compile_context>

<pallas_src>
import jax
import jax.numpy as jnp
from jax.experimental import pallas as pl
from jax.experimental.pallas import tpu as pltpu


_LANES = 128
_TINY_INPUT_BYTES = 512 * 1024        # whole-problem single-step threshold
_MEGACORE_SPLIT_BYTES = 1 << 20       # only force extra row tiles above this


def _add_inverse_kernel(x_ref, o_ref):
    # x_ref: (..., R, 128) or (B, T) block; o_ref has an extra "half" axis at
    # position 1: o_ref[:, 0] = x, o_ref[:, 1] = 1 - x.
    # Keep this body as exactly one vsub + two whole-block stores.
    x = x_ref[...]
    o_ref[:, 0] = x
    o_ref[:, 1] = jnp.asarray(1, dtype=x.dtype) - x


def _round_up(n, m):
    return ((n + m - 1) // m) * m


def _tuning():
    """Per-generation (v5e/v6e vs v7x) tile-size / scoped-VMEM selection."""
    max_tile_rows = 4096               # v5e/v6e: step DMA ~4.4-7.3 us, overhead <8%
    vmem_limit = 32 * 1024 * 1024
    try:
        info = pltpu.get_tpu_info()
        # v7x: 64 MiB per-TC VMEM but ~3.2 TB/s HBM -> double the tile so the
        # ~0.35 us/step fixed cost stays small; 24 MiB double-buffered fits.
        if info.vmem_capacity_bytes <= 64 * 1024 * 1024:
            max_tile_rows = 8192
            vmem_limit = 48 * 1024 * 1024
    except Exception:
        pass                            # non-TPU / API mismatch: keep defaults
    return max_tile_rows, vmem_limit


def add_inverse(x):
    """Pallas TPU implementation of AddInverse (dim=1). x: (B, C, H, W)."""
    B, C, H, W = x.shape
    F = C * H * W
    dtype = x.dtype
    itemsize = jnp.dtype(dtype).itemsize
    sub_mult = max(8, 32 // itemsize)   # packed sublane multiple: 8/16/32
    max_tile_rows, vmem_limit = _tuning()

    cost = pl.CostEstimate(
        flops=B * F, transcendentals=0, bytes_accessed=3 * B * F * itemsize
    )

    def _params(sem):
        return pltpu.CompilerParams(
            dimension_semantics=sem, vmem_limit_bytes=vmem_limit
        )

    if F % _LANES == 0:
        rows = F // _LANES
        x3 = x.reshape(B, rows, _LANES)             # metadata-only reshape

        if B * rows * _LANES * itemsize <= _TINY_INPUT_BYTES:
            # Tiny problem: one grid step, batch folded into the block.
            out = pl.pallas_call(
                _add_inverse_kernel,
                out_shape=jax.ShapeDtypeStruct((B, 2, rows, _LANES), dtype),
                grid_spec=pltpu.PrefetchScalarGridSpec(
                    num_scalar_prefetch=0,
                    grid=(1,),
                    in_specs=[
                        pl.BlockSpec((B, rows, _LANES), lambda i: (0, 0, 0)),
                    ],
                    out_specs=pl.BlockSpec(
                        (B, 2, rows, _LANES), lambda i: (0, 0, 0, 0)
                    ),
                ),
                compiler_params=_params(("arbitrary",)),
                cost_estimate=cost,
            )(x3)
            return out.reshape(B, 2 * C, H, W)

        # Balanced row tiling: over-coverage is at most sub_mult*n_tiles rows,
        # and the ragged final row-tile is masked by Pallas (no pad/slice).
        n_tiles = pl.cdiv(rows, max_tile_rows)
        # v7x megacore: guarantee enough grid steps for 2 TCs + pipeline
        # overlap when batch is small but the per-image slab is big.
        if B * n_tiles < 4 and rows * _LANES * itemsize >= _MEGACORE_SPLIT_BYTES:
            n_tiles = max(n_tiles, min(pl.cdiv(4, B), rows // sub_mult))
        tile_rows = _round_up(pl.cdiv(rows, n_tiles), sub_mult)
        tile_rows = min(tile_rows, _round_up(rows, sub_mult))
        n_tiles = pl.cdiv(rows, tile_rows)

        out = pl.pallas_call(
            _add_inverse_kernel,
            out_shape=jax.ShapeDtypeStruct((B, 2, rows, _LANES), dtype),
            grid_spec=pltpu.PrefetchScalarGridSpec(
                num_scalar_prefetch=0,
                grid=(B, n_tiles),
                in_specs=[
                    pl.BlockSpec((1, tile_rows, _LANES), lambda b, t: (b, t, 0)),
                ],
                out_specs=pl.BlockSpec(
                    (1, 2, tile_rows, _LANES), lambda b, t: (b, 0, t, 0)
                ),
            ),
            compiler_params=_params(("parallel", "parallel")),
            cost_estimate=cost,
        )(x3)
        return out.reshape(B, 2 * C, H, W)

    # Ragged path: F not a multiple of 128.  Work on the flat (B, F) view and
    # tile the lane dim in 128-multiples; Pallas masks the partial final block,
    # so there is no wrapper jnp.pad / output slice (no extra HBM traffic).
    x2 = x.reshape(B, F)
    # Budget ~12 MiB of double-buffered VMEM including the sublane padding a
    # small leading B incurs ((B, T) pads to (round_up(B, sub), T), the output
    # half-axis pads 2 -> sub_mult sublanes per image).
    in_pad_rows = _round_up(B, sub_mult)
    out_pad_rows = B * _round_up(2, sub_mult)
    budget = 12 * 1024 * 1024
    max_tile_lanes = budget // (2 * (in_pad_rows + out_pad_rows) * itemsize)
    max_tile_lanes = max(_LANES, (max_tile_lanes // _LANES) * _LANES)

    n_tiles = pl.cdiv(F, max_tile_lanes)
    tile_lanes = _round_up(pl.cdiv(F, n_tiles), _LANES)
    n_tiles = pl.cdiv(F, tile_lanes)

    out = pl.pallas_call(
        _add_inverse_kernel,
        out_shape=jax.ShapeDtypeStruct((B, 2, F), dtype),
        grid_spec=pltpu.PrefetchScalarGridSpec(
            num_scalar_prefetch=0,
            grid=(n_tiles,),
            in_specs=[pl.BlockSpec((B, tile_lanes), lambda t: (0, t))],
            out_specs=pl.BlockSpec((B, 2, tile_lanes), lambda t: (0, 0, t)),
        ),
        compiler_params=_params(("parallel",)),
        cost_estimate=cost,
    )(x2)
    return out.reshape(B, 2 * C, H, W)


if __name__ == "__main__":
    key = jax.random.PRNGKey(0)

    # Primary check: shapes implied by the module (batch=2, channels=4, 16x16).
    # F = 1024 -> lane-aligned tiny path (single grid step).
    x = jax.random.uniform(key, (2, 4, 16, 16), dtype=jnp.float32)
    out = jax.block_until_ready(add_inverse(x))
    ref = jnp.concatenate([x, 1.0 - x], axis=1)
    assert out.shape == (2, 8, 16, 16), out.shape
    assert out.dtype == x.dtype, out.dtype
    assert jnp.allclose(out, ref), "mismatch vs reference (tiny aligned case)"

    # Ragged-F check (F = 765, not a multiple of 128): exercises the masked
    # edge-block path with no wrapper pad/slice.
    x2 = jax.random.uniform(jax.random.PRNGKey(1), (2, 3, 15, 17), dtype=jnp.float32)
    out2 = jax.block_until_ready(add_inverse(x2))
    ref2 = jnp.concatenate([x2, 1.0 - x2], axis=1)
    assert out2.shape == (2, 6, 15, 17), out2.shape
    assert jnp.allclose(out2, ref2), "mismatch vs reference (ragged case)"

    # Larger aligned check: exercises the tiled (grid=(B, n_tiles)) path.
    x3 = jax.random.uniform(jax.random.PRNGKey(2), (2, 16, 128, 128), dtype=jnp.float32)
    out3 = jax.block_until_ready(add_inverse(x3))
    ref3 = jnp.concatenate([x3, 1.0 - x3], axis=1)
    assert out3.shape == (2, 32, 128, 128), out3.shape
    assert jnp.allclose(out3, ref3), "mismatch vs reference (tiled aligned case)"

    print("KERNEL_OK")
</pallas_src>

<mosaic_0001>
module attributes {stable_mosaic.version = 11 : i64} {
  func.func @_add_inverse_kernel(%arg0: i32, %arg1: memref<2x8x128xf32, #tpu.memory_space<vmem>>, %arg2: memref<2x2x8x128xf32, #tpu.memory_space<vmem>>) attributes {dimension_semantics = [#tpu.dimension_semantics<arbitrary>], iteration_bounds = array<i64: 1>, scalar_prefetch = 0 : i64, scratch_operands = 0 : i64, tpu.core_type = #tpu.core_type<tc>, window_params = [{pipeline_mode = #tpu.pipeline_mode<synchronous>, transform_indices = @transform_0, window_bounds = array<i64: 2, 8, 128>}, {pipeline_mode = #tpu.pipeline_mode<synchronous>, transform_indices = @transform_1, window_bounds = array<i64: 2, 2, 8, 128>}]} {
    %c0 = arith.constant 0 : index
    %c0_0 = arith.constant 0 : index
    %c0_1 = arith.constant 0 : index
    %0 = vector.load %arg1[%c0, %c0_0, %c0_1] : memref<2x8x128xf32, #tpu.memory_space<vmem>>, vector<2x8x128xf32>
    %c0_2 = arith.constant 0 : index
    %c0_3 = arith.constant 0 : index
    %c0_4 = arith.constant 0 : index
    %c0_5 = arith.constant 0 : index
    %1 = vector.load %arg2[%c0_2, %c0_3, %c0_4, %c0_5] : memref<2x2x8x128xf32, #tpu.memory_space<vmem>>, vector<2x1x8x128xf32>
    %2 = vector.shape_cast %1 : vector<2x1x8x128xf32> to vector<2x8x128xf32>
    %3 = vector.shape_cast %0 : vector<2x8x128xf32> to vector<2x1x8x128xf32>
    tpu.vector_store %arg2[%c0_2, %c0_3, %c0_4, %c0_5], %3 {strides = array<i32>} : memref<2x2x8x128xf32, #tpu.memory_space<vmem>>, vector<2x1x8x128xf32>,
    %cst = arith.constant 1.000000e+00 : f32
    %4 = vector.broadcast %cst : f32 to vector<2x8x128xf32>
    %5 = arith.subf %4, %0 : vector<2x8x128xf32>
    %c0_6 = arith.constant 0 : index
    %c1 = arith.constant 1 : index
    %c0_7 = arith.constant 0 : index
    %c0_8 = arith.constant 0 : index
    %6 = vector.load %arg2[%c0_6, %c1, %c0_7, %c0_8] : memref<2x2x8x128xf32, #tpu.memory_space<vmem>>, vector<2x1x8x128xf32>
    %7 = vector.shape_cast %6 : vector<2x1x8x128xf32> to vector<2x8x128xf32>
    %8 = vector.shape_cast %5 : vector<2x8x128xf32> to vector<2x1x8x128xf32>
    tpu.vector_store %arg2[%c0_6, %c1, %c0_7, %c0_8], %8 {strides = array<i32>} : memref<2x2x8x128xf32, #tpu.memory_space<vmem>>, vector<2x1x8x128xf32>,
    return
  }
  func.func @transform_0(%arg0: i32) -> (i32, i32, i32) {
    %c0_i32 = arith.constant 0 : i32
    %c0_i32_0 = arith.constant 0 : i32
    %c0_i32_1 = arith.constant 0 : i32
    %c0_i32_2 = arith.constant 0 : i32
    return %c0_i32, %c0_i32_0, %c0_i32_1 : i32, i32, i32
  }
  func.func @transform_1(%arg0: i32) -> (i32, i32, i32, i32) {
    %c0_i32 = arith.constant 0 : i32
    %c0_i32_0 = arith.constant 0 : i32
    %c0_i32_1 = arith.constant 0 : i32
    %c0_i32_2 = arith.constant 0 : i32
    %c0_i32_3 = arith.constant 0 : i32
    return %c0_i32, %c0_i32_0, %c0_i32_1, %c0_i32_2 : i32, i32, i32, i32
  }
}

</mosaic_0001>

<bundles_post_ra>
// kernel: tpu_custom_call.1
= control target key start
LH: loop header
LB: loop body
LE: loop exit
PB: predicated region body
PF: predicated region fallthrough
CT: control target
= control target key end

     0   :  { %6 = vsyncpa [#allocation3], 0  ;;  %s129_s0 = inlined_call_operand.hbm [shape: f32[2,8,128], index: 0, kind: input, shape index: {}]   ;;  %s130_s1 = inlined_call_operand.hbm [shape: f32[2,2,8,128], index: 1, kind: output, shape index: {}]  }
   0x1   :  { %7 = vsyncpa [#allocation4], 0  ;;  %s12_s8 = sshll.u32 %s129_s0, 4  ;;  %s109_s9 = smov [#allocation2]   ;;  %s13_s8 = int_to_ptr.hbm [resolvable:$true] %s12_s8 }
   0x2   :  { %s14_s10 = sshll.u32 %s109_s9, 4  ;;  %s110_s11 = smov 128   ;;  %s15_s10 = int_to_ptr.vmem [resolvable:$true] %s14_s10 }
   0x3   :  { %s111_s12 = smov 8  }
   0x4   :  { %20 = dma.hbm_to_vmem [thread:$0]  %s13_s8, 256, %s15_s10, [#allocation3], %s110_s11, %s110_s11, %s111_s12  }
   0x5   :  { %105 = dma.done.wait [#allocation3], 256  }
   0x6   :  { %106 = vsyncadd [#allocation3], 4294967040  ;;  %s112_s13 = smov [#allocation5]   ;;  %s40_s17 = sshll.u32 %s130_s1, 4  ;;  %v25_v0 = vld [vmem:[#allocation2] sm:$0xff]  ;;  %v26_v1 = vld [vmem:[#allocation2 + $0x8] sm:$0xff]  ;;  %s41_s17 = int_to_ptr.hbm [resolvable:$true] %s40_s17 }
   0x7   :  { %s38_s14 = sshll.u32 %s112_s13, 4  ;;  %27 = vst [vmem:[#allocation5] sm:$0xff] %v25_v0  ;;  %v29_v2 = vsub.f32 1.0, %v25_v0  ;;  %v30_v3 = vsub.f32 1.0, %v26_v1  ;;  %s39_s14 = int_to_ptr.vmem [resolvable:$true] %s38_s14 }
   0x8   :  { %28 = vst [vmem:[#allocation5 + $0x10] sm:$0xff] %v26_v1 }
   0x9   :  { %32 = vst [vmem:[#allocation5 + $0x8] sm:$0xff] %v29_v2 }
   0xa   :  { %33 = vst [vmem:[#allocation5 + $0x18] sm:$0xff] %v30_v3 }
   0xb   :  { %46 = dma.vmem_to_hbm [thread:$0]  %s39_s14, 512, %s41_s17, [#allocation4], %s110_s11, %s110_s11, %s111_s12  }
   0xc   :  { %107 = dma.done.wait [#allocation4], 512  }
   0xd   :  { %108 = vsyncadd [#allocation4], 4294966784 }
   0xe   :  { %51 = vsyncpa [#allocation3], 1 }
   0xf   :  { %52 = vsyncpa [#allocation4], 1 }

</bundles_post_ra>
